<compile_context>
chip_gen: v5e
topology: v5e:2x2
jax: 0.10.0
libtpu: 0.0.40
codegen_flags: <defaults>
</compile_context>

<pallas_src>
import jax
import jax.numpy as jnp
from jax.experimental import pallas as pl
from jax.experimental.pallas import tpu as pltpu

IN_FEATURES = 3
OUT_FEATURES = 1

LANE = 128
SUBLANE = 8
MAX_TILE_ROWS = 2048   # rows-of-128 per grid step -> 262,144 outputs / step
                       # (f32: 3 MiB in + 1 MiB out; 8 MiB double-buffered)


def _linear_kernel(params_ref, x_ref, o_ref):
    """y = w0*x0 + w1*x1 + w2*x2 + b on fully dense (T, 128) slabs.

    params_ref : SMEM (4,)        f32        -> [w0, w1, w2, b]
    x_ref      : VMEM (3, T, 128) x.dtype    -> feature-major, sublane+lane dense
    o_ref      : VMEM (T, 128)    f32        -> lane dense, unmasked vst
    """
    w0 = params_ref[0]
    w1 = params_ref[1]
    w2 = params_ref[2]
    b = params_ref[3]
    x0 = x_ref[0].astype(jnp.float32)
    x1 = x_ref[1].astype(jnp.float32)
    x2 = x_ref[2].astype(jnp.float32)
    o_ref[...] = w0 * x0 + w1 * x1 + w2 * x2 + b


def _select_tile_rows(num_row_groups):
    """Rows-of-128 per grid step: large tiles, >=2 steps when possible (v7x)."""
    r = num_row_groups
    if r > MAX_TILE_ROWS:
        return MAX_TILE_ROWS
    if r >= 2 * SUBLANE:
        half = pl.cdiv(r, 2)
        return ((half + SUBLANE - 1) // SUBLANE) * SUBLANE  # multiple of 8
    return r  # equals full dim -> satisfies (8,128) block constraint


@jax.jit
def pallas_linear(x, weight, bias):
    """nn.Linear(3, 1) forward: y = x @ weight.T + bias.

    x:      (..., 3)  float32 or bfloat16
    weight: (1, 3)
    bias:   (1,)
    returns (..., 1) float32
    """
    lead = x.shape[:-1]
    assert x.shape[-1] == IN_FEATURES
    x2 = x.reshape(-1, IN_FEATURES)
    if x2.dtype not in (jnp.float32, jnp.bfloat16):
        x2 = x2.astype(jnp.float32)
    m = x2.shape[0]

    if m == 0:  # empty batch
        return jnp.zeros(lead + (OUT_FEATURES,), jnp.float32)

    # Feature-major layout (3, M): lane-dense rows, 3 contiguous DMA strips.
    # Under jit, transpose + 128-lane pad + reshape fuse into a single copy.
    x_t = x2.T                                           # (3, M), native dtype

    m128 = pl.cdiv(m, LANE) * LANE                       # pad lanes only
    if m128 != m:
        x_t = jnp.pad(x_t, ((0, 0), (0, m128 - m)))
    r = m128 // LANE
    x_t3 = x_t.reshape(IN_FEATURES, r, LANE)             # free row-major reshape

    tile_rows = _select_tile_rows(r)
    grid = (pl.cdiv(r, tile_rows),)                      # tail block is masked

    # 3 weights + bias as 4 SMEM scalars (no padded weight/bias tensors).
    params = jnp.concatenate(
        [weight.reshape(-1).astype(jnp.float32),
         bias.reshape(-1).astype(jnp.float32)])          # (4,)

    out = pl.pallas_call(
        _linear_kernel,
        out_shape=jax.ShapeDtypeStruct((r, LANE), jnp.float32),
        grid=grid,
        in_specs=[
            pl.BlockSpec(memory_space=pltpu.MemorySpace.SMEM),
            pl.BlockSpec((IN_FEATURES, tile_rows, LANE), lambda i: (0, i, 0)),
        ],
        out_specs=pl.BlockSpec((tile_rows, LANE), lambda i: (i, 0)),
        compiler_params=pltpu.CompilerParams(
            dimension_semantics=("parallel",)),
    )(params, x_t3)

    # (R,128) row-major flatten recovers original row order; drop lane padding.
    y = out.reshape(-1)[:m]
    return y.reshape(lead + (OUT_FEATURES,))


def _linear_ref(x, weight, bias):
    # Exact f32 reference (mathematically x @ W.T + b).
    return jnp.sum(x * weight.reshape(-1), axis=-1, keepdims=True) + bias


if __name__ == "__main__":
    key = jax.random.PRNGKey(0)
    k_x, k_w, k_b, k_x2, k_x3 = jax.random.split(key, 5)

    # nn.Linear(3, 1) init range: U(-1/sqrt(fan_in), 1/sqrt(fan_in)).
    bound = 1.0 / (IN_FEATURES ** 0.5)
    weight = jax.random.uniform(k_w, (OUT_FEATURES, IN_FEATURES),
                                minval=-bound, maxval=bound, dtype=jnp.float32)
    bias = jax.random.uniform(k_b, (OUT_FEATURES,),
                              minval=-bound, maxval=bound, dtype=jnp.float32)

    # 1) Small batch of 8 rows with 3 features.
    x = jax.random.normal(k_x, (8, IN_FEATURES), dtype=jnp.float32)
    y = pallas_linear(x, weight, bias)
    jax.block_until_ready(y)
    assert y.shape == (8, OUT_FEATURES)
    assert jnp.allclose(y, _linear_ref(x, weight, bias), atol=1e-5, rtol=1e-5)

    # 2) Non-multiple-of-128 batch with extra leading dims (lane pad + flatten).
    x2 = jax.random.normal(k_x2, (2, 50, IN_FEATURES), dtype=jnp.float32)
    y2 = pallas_linear(x2, weight, bias)
    jax.block_until_ready(y2)
    assert y2.shape == (2, 50, OUT_FEATURES)
    assert jnp.allclose(y2, _linear_ref(x2, weight, bias), atol=1e-5, rtol=1e-5)

    # 3) Larger batch exercising the multi-step ("parallel") grid path.
    x3 = jax.random.normal(k_x3, (2048, IN_FEATURES), dtype=jnp.float32)
    y3 = pallas_linear(x3, weight, bias)
    jax.block_until_ready(y3)
    assert y3.shape == (2048, OUT_FEATURES)
    assert jnp.allclose(y3, _linear_ref(x3, weight, bias), atol=1e-5, rtol=1e-5)

    print("KERNEL_OK")
</pallas_src>

<mosaic_0001>
module attributes {stable_mosaic.version = 11 : i64} {
  func.func @_linear_kernel(%arg0: i32, %arg1: memref<4xf32, #tpu.memory_space<smem>>, %arg2: memref<3x1x128xf32, #tpu.memory_space<vmem>>, %arg3: memref<1x128xf32, #tpu.memory_space<vmem>>) attributes {dimension_semantics = [#tpu.dimension_semantics<parallel>], iteration_bounds = array<i64: 1>, scalar_prefetch = 0 : i64, scratch_operands = 0 : i64, tpu.core_type = #tpu.core_type<tc>, window_params = [{transform_indices = @transform_0, window_bounds = array<i64: 4>}, {transform_indices = @transform_1, window_bounds = array<i64: 3, 1, 128>}, {transform_indices = @transform_2, window_bounds = array<i64: 1, 128>}]} {
    %c0 = arith.constant 0 : index
    %0 = memref.load %arg1[%c0] : memref<4xf32, #tpu.memory_space<smem>>
    %c1 = arith.constant 1 : index
    %1 = memref.load %arg1[%c1] : memref<4xf32, #tpu.memory_space<smem>>
    %c2 = arith.constant 2 : index
    %2 = memref.load %arg1[%c2] : memref<4xf32, #tpu.memory_space<smem>>
    %c3 = arith.constant 3 : index
    %3 = memref.load %arg1[%c3] : memref<4xf32, #tpu.memory_space<smem>>
    %c0_0 = arith.constant 0 : index
    %c0_1 = arith.constant 0 : index
    %c0_2 = arith.constant 0 : index
    %4 = vector.load %arg2[%c0_0, %c0_1, %c0_2] : memref<3x1x128xf32, #tpu.memory_space<vmem>>, vector<1x1x128xf32>
    %5 = vector.shape_cast %4 : vector<1x1x128xf32> to vector<1x128xf32>
    %c1_3 = arith.constant 1 : index
    %c0_4 = arith.constant 0 : index
    %c0_5 = arith.constant 0 : index
    %6 = vector.load %arg2[%c1_3, %c0_4, %c0_5] : memref<3x1x128xf32, #tpu.memory_space<vmem>>, vector<1x1x128xf32>
    %7 = vector.shape_cast %6 : vector<1x1x128xf32> to vector<1x128xf32>
    %c2_6 = arith.constant 2 : index
    %c0_7 = arith.constant 0 : index
    %c0_8 = arith.constant 0 : index
    %8 = vector.load %arg2[%c2_6, %c0_7, %c0_8] : memref<3x1x128xf32, #tpu.memory_space<vmem>>, vector<1x1x128xf32>
    %9 = vector.shape_cast %8 : vector<1x1x128xf32> to vector<1x128xf32>
    %10 = vector.broadcast %0 : f32 to vector<1x128xf32>
    %11 = arith.mulf %10, %5 : vector<1x128xf32>
    %12 = vector.broadcast %1 : f32 to vector<1x128xf32>
    %13 = arith.mulf %12, %7 : vector<1x128xf32>
    %14 = arith.addf %11, %13 : vector<1x128xf32>
    %15 = vector.broadcast %2 : f32 to vector<1x128xf32>
    %16 = arith.mulf %15, %9 : vector<1x128xf32>
    %17 = arith.addf %14, %16 : vector<1x128xf32>
    %18 = vector.broadcast %3 : f32 to vector<1x128xf32>
    %19 = arith.addf %17, %18 : vector<1x128xf32>
    %c0_9 = arith.constant 0 : index
    %c0_10 = arith.constant 0 : index
    %20 = vector.load %arg3[%c0_9, %c0_10] : memref<1x128xf32, #tpu.memory_space<vmem>>, vector<1x128xf32>
    tpu.vector_store %arg3[%c0_9, %c0_10], %19 {strides = array<i32>} : memref<1x128xf32, #tpu.memory_space<vmem>>, vector<1x128xf32>,
    return
  }
  func.func @transform_0(%arg0: i32) -> i32 {
    %c0_i32 = arith.constant 0 : i32
    %c0_i32_0 = arith.constant 0 : i32
    return %c0_i32 : i32
  }
  func.func @transform_1(%arg0: i32) -> (i32, i32, i32) {
    %c0_i32 = arith.constant 0 : i32
    %c0_i32_0 = arith.constant 0 : i32
    %c0_i32_1 = arith.constant 0 : i32
    return %c0_i32, %arg0, %c0_i32_0 : i32, i32, i32
  }
  func.func @transform_2(%arg0: i32) -> (i32, i32) {
    %c0_i32 = arith.constant 0 : i32
    %c0_i32_0 = arith.constant 0 : i32
    return %arg0, %c0_i32 : i32, i32
  }
}

</mosaic_0001>

<bundles_post_ra>
// kernel: pallas_linear.1
= control target key start
LH: loop header
LB: loop body
LE: loop exit
PB: predicated region body
PF: predicated region fallthrough
CT: control target
= control target key end

     0   :  { %7 = vsyncpa [#allocation3], 0  ;;  %s69_s12 = smov [#allocation2]   ;;  %s100_s0 = inlined_call_operand.vmem [shape: f32[4], index: 0, kind: input, shape index: {}]   ;;  %s101_s1 = inlined_call_operand.vmem [shape: f32[3,1,128], index: 1, kind: input, shape index: {}]   ;;  %s102_s2 = inlined_call_operand.vmem [shape: f32[1,128], index: 2, kind: output, shape index: {}]  }
   0x1   :  { %s13_s11 = sshll.u32 %s100_s0, 4  ;;  %s14_s11 = int_to_ptr.vmem [resolvable:$true] %s13_s11 }
   0x2   :  { %16 = dma.vmem_to_smem %s14_s11, 16, %s69_s12, [#allocation3]  }
   0x3   :  { %67 = dma.done.wait [#allocation3], 16  }
   0x4   :  { %68 = vsyncadd [#allocation3], 4294967280 }
   0x5   :  { %23 = sfence }
   0x6   :  { %s24_s13 = sld [smem:[#allocation2]]  ;;  %v28_v0 = vld [vmem:[%s101_s1] sm:$0x1]  ;;  %v52_v1 = vld [vmem:[%s101_s1 + $0x1] sm:$0x1] }
   0x7   :  { %s49_s14 = sld [smem:[#allocation2 + $0x1]]  ;;  %v53_v2 = vld [vmem:[%s101_s1 + $0x2] sm:$0x1] }
   0x8   :  { %s50_s15 = sld [smem:[#allocation2 + $0x2]] }
   0x9   :  { %s51_s16 = sld [smem:[#allocation2 + $0x3]] }
   0xc   :  { %v33_v3 = vstv %s24_s13 }
   0xd   :  { %v34_v4 = vmul.f32 %v33_v3, %v28_v0  ;;  %v35_v5 = vstv %s49_s14 }
   0xe   :  { %v36_v6 = vmul.f32 %v52_v1, %v35_v5  ;;  %v38_v7 = vstv %s50_s15 }
   0xf   :  { %v39_v8 = vmul.f32 %v53_v2, %v38_v7  ;;  %v41_v10 = vstv %s51_s16 }
  0x10   :  { %v37_v9 = vadd.f32 %v36_v6, %v34_v4 }
  0x12   :  { %v40_v11 = vadd.f32 %v39_v8, %v37_v9 }
  0x14   :  { %v42_v12 = vadd.f32 %v41_v10, %v40_v11 }
  0x16   :  { %43 = vst [vmem:[%s102_s2] sm:$0x1] %v42_v12 }
  0x17   :  { %48 = vsyncpa [#allocation3], 1 }

</bundles_post_ra>
